<compile_context>
chip_gen: v5e
topology: v5e:2x2
jax: 0.10.0
libtpu: 0.0.40
codegen_flags: <defaults>
</compile_context>

<pallas_src>
import functools

import jax
import jax.numpy as jnp
from jax.experimental import pallas as pl
from jax.experimental.pallas import tpu as pltpu

# Conservative VMEM budget used for tile sizing (leaves headroom on v7x's
# 64 MiB physical VMEM and for compiler-internal scratch on all generations).
_TILE_BUDGET_BYTES = 12 * 1024 * 1024
# Scoped VMEM limit handed to Mosaic (above v5e's 16 MiB default, still safe
# on v7x where physical VMEM is 64 MiB).
_VMEM_LIMIT_BYTES = 32 * 1024 * 1024
# Never request more than this many lanes per block; beyond ~2048 the roofline
# gain is flat while VMEM pressure keeps growing.
_MAX_LANE_TILE = 2048


def _pixelnorm_kernel(x_ref, o_ref, *, eps):
    # x_ref block: (Nb, C, TILE) -- channel axis is axis=1 (matches torch dim=1)
    x = x_ref[...].astype(jnp.float32)
    ms = jnp.mean(x * x, axis=1, keepdims=True)        # (Nb, 1, TILE)
    inv = jax.lax.rsqrt(ms + eps)                      # one rsqrt per pixel (EUP)
    o_ref[...] = (x * inv).astype(o_ref.dtype)         # broadcast mul on the VPU


def _per_lane_bytes(C, in_bytes):
    # double-buffered input + output blocks plus f32 working copy, per lane.
    return C * (4 * in_bytes + 8)


def _choose_lane_tile(HW, C, in_bytes):
    """Largest lane tile that (a) is a multiple of 128 dividing HW, or the full
    spatial extent, and (b) fits the VMEM budget."""
    max_tile_lanes = max(128, _TILE_BUDGET_BYTES // _per_lane_bytes(C, in_bytes))
    if HW % 128 != 0:
        # Awkward spatial size: take the whole spatial axis as one block if it
        # fits (block dim == full array dim is always legal), otherwise fall
        # back to 128-lane tiles with a masked tail block.
        return HW if HW <= max_tile_lanes else 128
    cap = min(HW, _MAX_LANE_TILE, (max_tile_lanes // 128) * 128)
    for t in range(cap, 127, -128):
        if HW % t == 0:
            return t
    return 128


def _choose_batch_block(N, C, tile, HW, in_bytes):
    """Fold several batch elements per block when lane tiling degenerates."""
    if tile != HW or N <= 1:
        return 1
    per_batch = _per_lane_bytes(C, in_bytes) * HW
    nb = max(1, min(N, _TILE_BUDGET_BYTES // max(per_batch, 1)))
    while N % nb != 0:  # keep full blocks along the batch axis
        nb -= 1
    return nb


def pixel_norm(x, eps=1e-8):
    """x: (N, C, H, W) -> (N, C, H, W), unit-length feature vector per pixel."""
    N, C, H, W = x.shape
    HW = H * W
    in_bytes = jnp.dtype(x.dtype).itemsize

    tile = _choose_lane_tile(HW, C, in_bytes)
    nb = _choose_batch_block(N, C, tile, HW, in_bytes)

    x2 = x.reshape(N, C, HW)
    grid = (N // nb, pl.cdiv(HW, tile))

    out = pl.pallas_call(
        functools.partial(_pixelnorm_kernel, eps=eps),
        out_shape=jax.ShapeDtypeStruct((N, C, HW), x.dtype),
        grid=grid,
        in_specs=[pl.BlockSpec((nb, C, tile), lambda n, s: (n, 0, s))],
        out_specs=pl.BlockSpec((nb, C, tile), lambda n, s: (n, 0, s)),
        compiler_params=pltpu.CompilerParams(
            dimension_semantics=("parallel", "parallel"),
            vmem_limit_bytes=_VMEM_LIMIT_BYTES,
        ),
    )(x2)
    return out.reshape(N, C, H, W)


if __name__ == "__main__":
    key = jax.random.PRNGKey(0)
    x = jax.random.normal(key, (2, 4, 16, 16), dtype=jnp.float32)  # NCHW

    y = pixel_norm(x)
    jax.block_until_ready(y)

    # Pure-JAX reference (mirrors the PyTorch forward exactly).
    ref = x / jnp.sqrt(jnp.mean(x ** 2, axis=1, keepdims=True) + 1e-8)

    assert y.shape == x.shape and y.dtype == x.dtype
    assert jnp.allclose(y, ref, atol=1e-5, rtol=1e-5)
    print("KERNEL_OK")
</pallas_src>

<mosaic_0001>
module attributes {stable_mosaic.version = 11 : i64} {
  func.func @_pixelnorm_kernel(%arg0: i32, %arg1: i32, %arg2: memref<2x4x256xf32, #tpu.memory_space<vmem>>, %arg3: memref<2x4x256xf32, #tpu.memory_space<vmem>>) attributes {dimension_semantics = [#tpu.dimension_semantics<parallel>, #tpu.dimension_semantics<parallel>], iteration_bounds = array<i64: 1, 1>, scalar_prefetch = 0 : i64, scratch_operands = 0 : i64, tpu.core_type = #tpu.core_type<tc>, window_params = [{transform_indices = @transform_0, window_bounds = array<i64: 2, 4, 256>}, {transform_indices = @transform_1, window_bounds = array<i64: 2, 4, 256>}]} {
    %c0 = arith.constant 0 : index
    %c0_0 = arith.constant 0 : index
    %c0_1 = arith.constant 0 : index
    %0 = vector.load %arg2[%c0, %c0_0, %c0_1] : memref<2x4x256xf32, #tpu.memory_space<vmem>>, vector<2x4x256xf32>
    %1 = arith.mulf %0, %0 : vector<2x4x256xf32>
    %cst = arith.constant dense<0.000000e+00> : vector<2x256xf32>
    %2 = vector.multi_reduction <add>, %1, %cst [1] : vector<2x4x256xf32> to vector<2x256xf32>
    %3 = vector.shape_cast %2 : vector<2x256xf32> to vector<2x1x256xf32>
    %cst_2 = arith.constant 4.000000e+00 : f32
    %4 = vector.broadcast %cst_2 : f32 to vector<2x1x256xf32>
    %5 = arith.divf %3, %4 : vector<2x1x256xf32>
    %cst_3 = arith.constant 9.99999993E-9 : f32
    %6 = vector.broadcast %cst_3 : f32 to vector<2x1x256xf32>
    %7 = arith.addf %5, %6 : vector<2x1x256xf32>
    %8 = math.rsqrt %7 : vector<2x1x256xf32>
    %9 = vector.broadcast %8 : vector<2x1x256xf32> to vector<2x4x256xf32>
    %10 = arith.mulf %0, %9 : vector<2x4x256xf32>
    %c0_4 = arith.constant 0 : index
    %c0_5 = arith.constant 0 : index
    %c0_6 = arith.constant 0 : index
    %11 = vector.load %arg3[%c0_4, %c0_5, %c0_6] : memref<2x4x256xf32, #tpu.memory_space<vmem>>, vector<2x4x256xf32>
    tpu.vector_store %arg3[%c0_4, %c0_5, %c0_6], %10 {strides = array<i32>} : memref<2x4x256xf32, #tpu.memory_space<vmem>>, vector<2x4x256xf32>,
    return
  }
  func.func @transform_0(%arg0: i32, %arg1: i32) -> (i32, i32, i32) {
    %c0_i32 = arith.constant 0 : i32
    %c0_i32_0 = arith.constant 0 : i32
    return %arg0, %c0_i32, %arg1 : i32, i32, i32
  }
  func.func @transform_1(%arg0: i32, %arg1: i32) -> (i32, i32, i32) {
    %c0_i32 = arith.constant 0 : i32
    %c0_i32_0 = arith.constant 0 : i32
    return %arg0, %c0_i32, %arg1 : i32, i32, i32
  }
}

</mosaic_0001>

<bundles_post_ra>
// kernel: tpu_custom_call.1
= control target key start
LH: loop header
LB: loop body
LE: loop exit
PB: predicated region body
PF: predicated region fallthrough
CT: control target
= control target key end

     0   :  { %6 = vsyncpa [#allocation3], 0  ;;  %s269_s0 = inlined_call_operand.hbm [shape: f32[2,4,256], index: 0, kind: input, shape index: {}]   ;;  %s270_s1 = inlined_call_operand.hbm [shape: f32[2,4,256], index: 1, kind: output, shape index: {}]  }
   0x1   :  { %7 = vsyncpa [#allocation4], 0  ;;  %s12_s8 = sshll.u32 %s269_s0, 4  ;;  %s226_s9 = smov [#allocation2]   ;;  %s13_s8 = int_to_ptr.hbm [resolvable:$true] %s12_s8 }
   0x2   :  { %s14_s10 = sshll.u32 %s226_s9, 4  ;;  %s227_s11 = smov 128   ;;  %s15_s10 = int_to_ptr.vmem [resolvable:$true] %s14_s10 }
   0x3   :  { %s228_s12 = smov 8  }
   0x4   :  { %20 = dma.hbm_to_vmem [thread:$0]  %s13_s8, 256, %s15_s10, [#allocation3], %s227_s11, %s227_s11, %s228_s12  }
   0x5   :  { %222 = dma.done.wait [#allocation3], 256  }
   0x6   :  { %223 = vsyncadd [#allocation3], 4294967040  ;;  %v229_v0 = vmov 4.0   ;;  %v247_v1 = vld [vmem:[#allocation2] sm:$0xff]  ;;  %v249_v2 = vld [vmem:[#allocation2 + $0x8] sm:$0xff]  ;;  %vm42_vm0 = vcmask 1043456  }
   0x7   :  { %164 = vrcp.f32 %v229_v0  ;;  %v27_v3 = vmul.f32 %v247_v1, %v247_v1  ;;  %v28_v4 = vmul.f32 %v249_v2, %v249_v2  ;;  %s230_s0 = smov [#allocation5]   ;;  %s146_s16 = sshll.u32 %s270_s1, 4  ;;  %s147_s16 = int_to_ptr.hbm [resolvable:$true] %s146_s16 }
   0x8   :  { %s144_s13 = sshll.u32 %s230_s0, 4  ;;  %s145_s13 = int_to_ptr.vmem [resolvable:$true] %s144_s13 }
   0x9   :  { %31 = vst [vmem:[#allocation1] ss:$2 sm:$0xff] %v27_v3 }
   0xa   :  { %35 = vst [vmem:[#allocation1 + $0x10] ss:$2 sm:$0xff] %v28_v4 }
   0xd   :  { %v165_v5 = vpop.eup %164 }
   0xe   :  { %v72_v6 = vmul.f32 4.0, %v165_v5  ;;  %vm76_vm1 = vweird.f32 %v165_v5 }
  0x10   :  { %v73_v7 = vsub.f32 1.0, %v72_v6  ;;  %v32_v8 = vld.sshfl [vmem:[#allocation1] sm:$0xff pattern:$0x75316420] }
  0x11   :  { %v33_v9 = vld.sshfl [vmem:[#allocation1 + $0x8] sm:$0xff pattern:$0x75316420]  ;;  %v37_v10 = vld.sshfl [vmem:[#allocation1 + $0x18] sm:$0xff pattern:$0x75316420] }
  0x12   :  { %v43_v11 = vsel %vm42_vm0, %v32_v8, 0.0  ;;  %v50_v12 = vsel %vm42_vm0, %v33_v9, 0.0  ;;  %v64_v15 = vsel %vm42_vm0, %v37_v10, 0.0  ;;  %v36_v16 = vld.sshfl [vmem:[#allocation1 + $0x10] sm:$0xff pattern:$0x75316420]  ;;  %v74_v18 = vmul.f32 %v165_v5, %v73_v7 }
  0x13   :  { %v44_v13 = vrot.slane %v43_v11, 4  ;;  %v51_v14 = vrot.slane %v50_v12, 4  ;;  %v65_v17 = vrot.slane %v64_v15, 4  ;;  %v57_v19 = vsel %vm42_vm0, %v36_v16, 0.0 }
  0x14   :  { %v58_v22 = vrot.slane %v57_v19, 4  ;;  %v75_v27 = vadd.f32 %v165_v5, %v74_v18 }
  0x15   :  { %v45_v20 = vadd.f32 %v44_v13, %v43_v11  ;;  %v52_v21 = vadd.f32 %v51_v14, %v50_v12  ;;  %v66_v23 = vadd.f32 %v65_v17, %v64_v15 }
  0x16   :  { %v59_v26 = vadd.f32 %v58_v22, %v57_v19  ;;  %v77_v36 = vsel %vm76_vm1, %v165_v5, %v75_v27 }
  0x17   :  { %v46_v24 = vrot.slane %v45_v20, 2  ;;  %v53_v25 = vrot.slane %v52_v21, 2  ;;  %v67_v28 = vrot.slane %v66_v23, 2 }
  0x18   :  { %v60_v31 = vrot.slane %v59_v26, 2 }
  0x19   :  { %v47_v29 = vadd.f32 %v46_v24, %v45_v20  ;;  %v54_v30 = vadd.f32 %v53_v25, %v52_v21  ;;  %v68_v32 = vadd.f32 %v67_v28, %v66_v23 }
  0x1a   :  { %v61_v35 = vadd.f32 %v60_v31, %v59_v26 }
  0x1b   :  { %v48_v33 = vrot.slane %v47_v29, 1  ;;  %v55_v34 = vrot.slane %v54_v30, 1  ;;  %v69_v37 = vrot.slane %v68_v32, 1 }
  0x1c   :  { %v62_v40 = vrot.slane %v61_v35, 1 }
  0x1d   :  { %v49_v38 = vadd.f32 %v48_v33, %v47_v29  ;;  %v56_v39 = vadd.f32 %v55_v34, %v54_v30  ;;  %v70_v41 = vadd.f32 %v69_v37, %v68_v32 }
  0x1e   :  { %v63_v44 = vadd.f32 %v62_v40, %v61_v35 }
  0x1f   :  { %v78_v42 = vmul.f32 %v77_v36, %v49_v38  ;;  %v79_v43 = vmul.f32 %v77_v36, %v56_v39  ;;  %v81_v45 = vmul.f32 %v77_v36, %v70_v41 }
  0x20   :  { %v80_v48 = vmul.f32 %v77_v36, %v63_v44 }
  0x21   :  { %v82_v46 = vadd.f32 1e-08, %v78_v42  ;;  %v83_v47 = vadd.f32 1e-08, %v79_v43  ;;  %v85_v49 = vadd.f32 1e-08, %v81_v45 }
  0x22   :  { %v84_v50 = vadd.f32 1e-08, %v80_v48 }
  0x23   :  { %166 = vrsqrt.f32 %v82_v46  ;;  %vm102_vm4 = vweird.f32 %v83_v47  ;;  %vm92_vm6 = vweird.f32 %v82_v46  ;;  %vm122_vm8 = vweird.f32 %v85_v49 }
  0x24   :  { %168 = vrsqrt.f32 %v83_v47  ;;  %vm112_vm12 = vweird.f32 %v84_v50 }
  0x25   :  { %170 = vrsqrt.f32 %v84_v50 }
  0x26   :  { %172 = vrsqrt.f32 %v85_v49 }
  0x29   :  { %v167_v51 = vpop.eup %166 }
  0x2a   :  { %v169_v52 = vpop.eup %168  ;;  %v87_v53 = vmul.f32 %v167_v51, %v82_v46  ;;  %vm93_vm3 = vweird.f32 %v167_v51 }
  0x2b   :  { %v171_v54 = vpop.eup %170  ;;  %v97_v55 = vmul.f32 %v169_v52, %v83_v47  ;;  %vm103_vm2 = vweird.f32 %v169_v52  ;;  %vm94_vm9 = vmor %vm92_vm6, %vm93_vm3 }
  0x2c   :  { %v173_v56 = vpop.eup %172  ;;  %v88_v57 = vmul.f32 %v167_v51, %v87_v53  ;;  %v107_v58 = vmul.f32 %v171_v54, %v84_v50  ;;  %vm104_vm7 = vmor %vm102_vm4, %vm103_vm2  ;;  %vm113_vm10 = vweird.f32 %v171_v54 }
  0x2d   :  { %v98_v59 = vmul.f32 %v169_v52, %v97_v55  ;;  %v117_v60 = vmul.f32 %v173_v56, %v85_v49  ;;  %vm123_vm5 = vweird.f32 %v173_v56  ;;  %vm114_vm13 = vmor %vm112_vm12, %vm113_vm10 }
  0x2e   :  { %v89_v61 = vmul.f32 0.5, %v88_v57  ;;  %v108_v62 = vmul.f32 %v171_v54, %v107_v58  ;;  %vm124_vm11 = vmor %vm122_vm8, %vm123_vm5 }
  0x2f   :  { %v99_v63 = vmul.f32 0.5, %v98_v59  ;;  %v118_v0 = vmul.f32 %v173_v56, %v117_v60 }
  0x30   :  { %v90_v3 = vsub.f32 1.5, %v89_v61  ;;  %v109_v4 = vmul.f32 0.5, %v108_v62 }
  0x31   :  { %v100_v5 = vsub.f32 1.5, %v99_v63  ;;  %v119_v6 = vmul.f32 0.5, %v118_v0 }
  0x32   :  { %v110_v7 = vsub.f32 1.5, %v109_v4  ;;  %v91_v8 = vmul.f32 %v167_v51, %v90_v3 }
  0x33   :  { %v101_v9 = vmul.f32 %v169_v52, %v100_v5  ;;  %v120_v10 = vsub.f32 1.5, %v119_v6 }
  0x34   :  { %v111_v12 = vmul.f32 %v171_v54, %v110_v7  ;;  %v95_v15 = vsel %vm94_vm9, %v167_v51, %v91_v8 }
  0x35   :  { %v105_v11 = vsel %vm104_vm7, %v169_v52, %v101_v9  ;;  %v121_v13 = vmul.f32 %v173_v56, %v120_v10 }
  0x36   :  { %v130_v14 = vrot.slane %v105_v11, 4  ;;  %v115_v20 = vsel %vm114_vm13, %v171_v54, %v111_v12 }
  0x37   :  { %v125_v16 = vsel %vm124_vm11, %v173_v56, %v121_v13 }
  0x38   :  { %v132_v17 = vsel %vm42_vm0, %v95_v15, %v130_v14  ;;  %v131_v18 = vrot.slane %v125_v16, 4 }
  0x39   :  { %v136_v19 = vmul.f32 %v132_v17, %v247_v1 }
  0x3a   :  { %v133_v21 = vsel %vm42_vm0, %v115_v20, %v131_v18 }
  0x3b   :  { %138 = vst [vmem:[#allocation5] sm:$0xff] %v136_v19  ;;  %v137_v22 = vmul.f32 %v133_v21, %v249_v2 }
  0x3d   :  { %139 = vst [vmem:[#allocation5 + $0x8] sm:$0xff] %v137_v22 }
  0x3e   :  { %152 = dma.vmem_to_hbm [thread:$0]  %s145_s13, 256, %s147_s16, [#allocation4], %s227_s11, %s227_s11, %s228_s12  }
  0x3f   :  { %224 = dma.done.wait [#allocation4], 256  }
  0x40   :  { %225 = vsyncadd [#allocation4], 4294967040 }
  0x41   :  { %157 = vsyncpa [#allocation3], 1 }
  0x42   :  { %158 = vsyncpa [#allocation4], 1 }

</bundles_post_ra>
